<compile_context>
chip_gen: v7x
topology: tpu7x:2x2x1
jax: 0.10.0
libtpu: 0.0.40
codegen_flags: <defaults>
</compile_context>

<pallas_src>
from functools import partial

import jax
import jax.numpy as jnp
from jax.experimental import pallas as pl
from jax.experimental.pallas import tpu as pltpu


def _round_up(n, m):
    return ((n + m - 1) // m) * m


def _pick_batch_tile(B, Np):
    # Pack batch elements per grid step until the flattened row count reaches
    # ~512 so LayerNorm / qkv / proj see a reasonable MXU M and per-grid-step
    # overhead is amortized for small shapes.  Bt must divide B.
    target_rows = 512
    bt = 1
    for cand in range(1, B + 1):
        if B % cand == 0 and cand * Np <= target_rows:
            bt = cand
    return bt


def _pick_exp_dtype():
    # bf16 EUP exists on v6e / v7x; v5e (and older) emulate bf16 elementwise,
    # so keep the softmax exp in f32 there.
    try:
        kind = jax.devices()[0].device_kind.lower()
    except Exception:
        return jnp.float32
    if "v6" in kind or "v7" in kind:
        return jnp.bfloat16
    return jnp.float32


def _vmem_limit_bytes(Bt, Np, C):
    # Rough working-set estimate (bytes), x2 safety margin, clamped to 3/4 of
    # physical VMEM (v7x: 64 MiB per TensorCore -> cap at 48 MiB).
    M = Bt * Np
    weights = 8 * C * C + 32 * C                    # bf16 qkv+proj weights, f32 biases
    blocks = 2 * 2 * M * C * 4                      # double-buffered f32 in + out blocks
    inter = (10 * M * C + 3 * Bt * Np * Np) * 4     # ln/qkv/q/k/v/scratch + score/prob tiles
    est = 2 * (weights + blocks + inter) + (8 << 20)
    try:
        cap = pltpu.get_tpu_info().vmem_capacity_bytes
    except Exception:
        cap = 128 << 20
    return int(min(max(est, 32 << 20), cap * 3 // 4))


def attention_only_kernel(x_ref, ln_w_ref, ln_b_ref, qkv_w_ref, qkv_b_ref,
                          proj_w_ref, proj_b_ref, o_ref, head_out_ref,
                          *, num_heads, n_valid, eps, compute_dtype, exp_dtype):
    # x_ref block is (Bt, Np, C); one grid step handles Bt batch elements.
    Bt, Np, C = x_ref.shape
    M = Bt * Np
    head_dim = C // num_heads

    # Flatten the batch tile for the dense projections (minor dim unchanged,
    # Np is a multiple of 8, so this is layout-free).
    xf = x_ref[...].reshape(M, C).astype(jnp.float32)

    # ---- norm1: LayerNorm over the channel dim (f32 stats) ----
    mean = jnp.mean(xf, axis=-1, keepdims=True)
    var = jnp.mean((xf - mean) ** 2, axis=-1, keepdims=True)
    xn = (xf - mean) * jax.lax.rsqrt(var + eps)
    xn = xn * ln_w_ref[0].astype(jnp.float32) + ln_b_ref[0].astype(jnp.float32)

    # ---- attn: fused qkv projection (bf16 operands, f32 accumulation).
    # The 1/sqrt(head_dim) softmax scale is already folded into the q columns
    # of qkv_w / qkv_b by the wrapper.
    qkv = jnp.dot(xn.astype(compute_dtype), qkv_w_ref[...],
                  preferred_element_type=jnp.float32)
    qkv = qkv + qkv_b_ref[0].astype(jnp.float32)    # (M, 3C), f32

    q = qkv[:, 0 * C:1 * C].astype(compute_dtype)
    k = qkv[:, 1 * C:2 * C].astype(compute_dtype)
    v = qkv[:, 2 * C:3 * C].astype(compute_dtype)

    # Additive key mask for padded tokens (built at trace time; no-op when the
    # token count is already aligned).  Kept in f32 so masked scores underflow
    # to exactly 0 after exp even when the exp runs in bf16.
    if n_valid < Np:
        key_idx = jax.lax.broadcasted_iota(jnp.int32, (1, 1, Np), 2)
        key_bias = jnp.where(key_idx < n_valid, 0.0, -1e30).astype(jnp.float32)
    else:
        key_bias = None

    # ---- per-head attention ----
    # Static Python loop => static lane slices (no dynamic lane relayouts).
    # Each head's context goes straight into the VMEM scratch so the big
    # (Bt, Np, Np) score/prob tiles do not stay live across heads; the output
    # projection runs once afterwards with full K = C systolic depth.
    for h in range(num_heads):
        lo = h * head_dim
        hi = lo + head_dim
        qh = q[:, lo:hi].reshape(Bt, Np, head_dim)
        kh = k[:, lo:hi].reshape(Bt, Np, head_dim)
        vh = v[:, lo:hi].reshape(Bt, Np, head_dim)

        # q @ k^T as an NT contraction over the shared last dim (no transpose).
        s = jnp.einsum('bqd,bkd->bqk', qh, kh,
                       preferred_element_type=jnp.float32)       # (Bt, Np, Np)
        if key_bias is not None:
            s = s + key_bias
        s = s - jnp.max(s, axis=-1, keepdims=True)                # f32
        p = jnp.exp(s.astype(exp_dtype)).astype(jnp.float32)      # EUP (bf16 on v6e/v7x)
        denom = jnp.sum(p, axis=-1, keepdims=True)                # f32 row sum
        p = p * pl.reciprocal(denom, approx=True)                 # EUP, not a VPU divide

        oh = jnp.einsum('bqk,bkd->bqd', p.astype(compute_dtype), vh,
                        preferred_element_type=jnp.float32)       # (Bt, Np, Dh)
        head_out_ref[:, lo:hi] = oh.reshape(M, head_dim).astype(compute_dtype)

    # ---- single full-depth output projection + bias ----
    proj = jnp.dot(head_out_ref[...], proj_w_ref[...],
                   preferred_element_type=jnp.float32)            # (M, C)
    proj = proj + proj_b_ref[0].astype(jnp.float32)

    # ---- residual add (drop_path is Identity; the two transposes cancel) ----
    o_ref[...] = (xf + proj).reshape(Bt, Np, C).astype(o_ref.dtype)


def attention_only(x, params, *, num_heads, compute_dtype=jnp.bfloat16):
    B, N, C = x.shape
    assert C % num_heads == 0
    head_dim = C // num_heads
    scale = head_dim ** -0.5

    # Pad the token dim so score tiles / activations are sublane-aligned
    # (lane-aligned once N is large).  Padded keys are masked in-kernel.
    Np = _round_up(N, 128) if N >= 128 else _round_up(N, 8)
    x_in = jnp.pad(x, ((0, 0), (0, Np - N), (0, 0))) if Np != N else x

    Bt = _pick_batch_tile(B, Np)
    M = Bt * Np

    ln_w = params["ln_w"].reshape(1, C).astype(jnp.float32)
    ln_b = params["ln_b"].reshape(1, C).astype(jnp.float32)

    # PyTorch Linear weights are (out, in): pre-transpose to (in, out) and fold
    # the softmax scale into the q columns (free, mathematically exact).
    qkv_w_t = params["qkv_w"].T.astype(jnp.float32)         # (C, 3C)
    qkv_b = params["qkv_b"].reshape(1, 3 * C).astype(jnp.float32)
    q_scale = jnp.concatenate(
        [jnp.full((C,), scale, jnp.float32), jnp.ones((2 * C,), jnp.float32)])
    qkv_w_t = (qkv_w_t * q_scale[None, :]).astype(compute_dtype)  # bf16 weights
    qkv_b = qkv_b * q_scale[None, :]                              # bias stays f32

    proj_w_t = params["proj_w"].T.astype(compute_dtype)     # (C, C), bf16
    proj_b = params["proj_b"].reshape(1, C).astype(jnp.float32)

    kernel = partial(attention_only_kernel,
                     num_heads=num_heads, n_valid=N, eps=1e-6,
                     compute_dtype=compute_dtype, exp_dtype=_pick_exp_dtype())

    # Constant weights/biases: whole-array VMEM residents -> no double-buffered
    # per-grid-step DMA for data whose index never changes.
    vmem_spec = pl.BlockSpec(memory_space=pltpu.MemorySpace.VMEM)

    out = pl.pallas_call(
        kernel,
        out_shape=jax.ShapeDtypeStruct((B, Np, C), x.dtype),
        grid=(B // Bt,),
        in_specs=[
            pl.BlockSpec((Bt, Np, C), lambda b: (b, 0, 0)),  # x (pipelined)
            vmem_spec,                                       # ln weight
            vmem_spec,                                       # ln bias
            vmem_spec,                                       # qkv weight^T (scaled, bf16)
            vmem_spec,                                       # qkv bias (scaled, f32)
            vmem_spec,                                       # proj weight^T (bf16)
            vmem_spec,                                       # proj bias (f32)
        ],
        out_specs=pl.BlockSpec((Bt, Np, C), lambda b: (b, 0, 0)),
        scratch_shapes=[pltpu.VMEM((M, C), compute_dtype)],  # per-head context slab
        compiler_params=pltpu.CompilerParams(
            dimension_semantics=("parallel",),               # batch axis -> megacore shard
            vmem_limit_bytes=_vmem_limit_bytes(Bt, Np, C),   # generation-aware, not a blanket 64 MiB
        ),
    )(x_in, ln_w, ln_b, qkv_w_t, qkv_b, proj_w_t, proj_b)

    if Np != N:
        out = out[:, :N, :]
    return out


def init_params(key, dim):
    # Deterministic synthetic init (module shapes from timm Block(dim, num_heads)).
    ks = jax.random.split(key, 4)
    std = 0.02
    return {
        "ln_w": jnp.ones((dim,), jnp.float32),
        "ln_b": jnp.zeros((dim,), jnp.float32),
        "qkv_w": std * jax.random.normal(ks[0], (3 * dim, dim), jnp.float32),
        "qkv_b": std * jax.random.normal(ks[1], (3 * dim,), jnp.float32),
        "proj_w": std * jax.random.normal(ks[2], (dim, dim), jnp.float32),
        "proj_b": std * jax.random.normal(ks[3], (dim,), jnp.float32),
    }


def reference(x, params, *, num_heads):
    # Pure-JAX f32 reference of x + attn(norm1(x)).
    B, N, C = x.shape
    Dh = C // num_heads
    scale = Dh ** -0.5
    xf = x.astype(jnp.float32)
    mean = xf.mean(-1, keepdims=True)
    var = ((xf - mean) ** 2).mean(-1, keepdims=True)
    xn = (xf - mean) / jnp.sqrt(var + 1e-6) * params["ln_w"] + params["ln_b"]
    qkv = xn @ params["qkv_w"].T + params["qkv_b"]          # (B, N, 3C)
    qkv = qkv.reshape(B, N, 3, num_heads, Dh).transpose(2, 0, 3, 1, 4)
    q, k, v = qkv[0], qkv[1], qkv[2]                        # (B, H, N, Dh)
    s = jnp.einsum("bhnd,bhmd->bhnm", q, k) * scale
    p = jax.nn.softmax(s, axis=-1)
    o = jnp.einsum("bhnm,bhmd->bhnd", p, v)
    o = o.transpose(0, 2, 1, 3).reshape(B, N, C)
    o = o @ params["proj_w"].T + params["proj_b"]
    return xf + o


if __name__ == "__main__":
    num_heads = 4
    key = jax.random.PRNGKey(0)
    kx, kp, kx2 = jax.random.split(key, 3)

    # Primary small shape: (B, N, C) = (2, 8, 32).
    B, N, C = 2, 8, 32
    x = jax.random.normal(kx, (B, N, C), jnp.float32)
    params = init_params(kp, C)

    out = jax.block_until_ready(attention_only(x, params, num_heads=num_heads))
    ref = reference(x, params, num_heads=num_heads)
    assert out.shape == (B, N, C)
    assert jnp.allclose(out, ref, atol=2e-2, rtol=2e-2), \
        float(jnp.max(jnp.abs(out - ref)))

    # Second shape exercising the token-padding + key-mask path (N=10 -> 16).
    x2 = jax.random.normal(kx2, (B, 10, C), jnp.float32)
    out2 = jax.block_until_ready(attention_only(x2, params, num_heads=num_heads))
    ref2 = reference(x2, params, num_heads=num_heads)
    assert out2.shape == (B, 10, C)
    assert jnp.allclose(out2, ref2, atol=2e-2, rtol=2e-2), \
        float(jnp.max(jnp.abs(out2 - ref2)))

    print("KERNEL_OK")
</pallas_src>

<mosaic_0001>
module attributes {stable_mosaic.version = 11 : i64} {
  func.func @attention_only_kernel(%arg0: i32, %arg1: memref<2x8x32xf32, #tpu.memory_space<vmem>>, %arg2: memref<1x32xf32, #tpu.memory_space<vmem>>, %arg3: memref<1x32xf32, #tpu.memory_space<vmem>>, %arg4: memref<32x96xbf16, #tpu.memory_space<vmem>>, %arg5: memref<1x96xf32, #tpu.memory_space<vmem>>, %arg6: memref<32x32xbf16, #tpu.memory_space<vmem>>, %arg7: memref<1x32xf32, #tpu.memory_space<vmem>>, %arg8: memref<2x8x32xf32, #tpu.memory_space<vmem>>, %arg9: memref<16x32xbf16, #tpu.memory_space<vmem>>) attributes {dimension_semantics = [#tpu.dimension_semantics<parallel>], iteration_bounds = array<i64: 1>, scalar_prefetch = 0 : i64, scratch_operands = 1 : i64, tpu.core_type = #tpu.core_type<tc>, window_params = [{transform_indices = @transform_0, window_bounds = array<i64: 2, 8, 32>}, {pipeline_mode = #tpu.pipeline_mode<synchronous>, transform_indices = @transform_1, window_bounds = array<i64: 1, 32>}, {pipeline_mode = #tpu.pipeline_mode<synchronous>, transform_indices = @transform_2, window_bounds = array<i64: 1, 32>}, {pipeline_mode = #tpu.pipeline_mode<synchronous>, transform_indices = @transform_3, window_bounds = array<i64: 32, 96>}, {pipeline_mode = #tpu.pipeline_mode<synchronous>, transform_indices = @transform_4, window_bounds = array<i64: 1, 96>}, {pipeline_mode = #tpu.pipeline_mode<synchronous>, transform_indices = @transform_5, window_bounds = array<i64: 32, 32>}, {pipeline_mode = #tpu.pipeline_mode<synchronous>, transform_indices = @transform_6, window_bounds = array<i64: 1, 32>}, {transform_indices = @transform_7, window_bounds = array<i64: 2, 8, 32>}]} {
    %c0 = arith.constant 0 : index
    %c0_0 = arith.constant 0 : index
    %c0_1 = arith.constant 0 : index
    %0 = vector.load %arg1[%c0, %c0_0, %c0_1] : memref<2x8x32xf32, #tpu.memory_space<vmem>>, vector<2x8x32xf32>
    %1 = vector.shape_cast %0 : vector<2x8x32xf32> to vector<16x32xf32>
    %cst = arith.constant dense<0.000000e+00> : vector<16xf32>
    %2 = vector.multi_reduction <add>, %1, %cst [1] : vector<16x32xf32> to vector<16xf32>
    %3 = vector.shape_cast %2 : vector<16xf32> to vector<16x1xf32>
    %cst_2 = arith.constant 3.200000e+01 : f32
    %4 = vector.broadcast %cst_2 : f32 to vector<16x1xf32>
    %5 = arith.divf %3, %4 : vector<16x1xf32>
    %6 = vector.broadcast %5 : vector<16x1xf32> to vector<16x32xf32>
    %7 = arith.subf %1, %6 : vector<16x32xf32>
    %8 = arith.mulf %7, %7 : vector<16x32xf32>
    %cst_3 = arith.constant dense<0.000000e+00> : vector<16xf32>
    %9 = vector.multi_reduction <add>, %8, %cst_3 [1] : vector<16x32xf32> to vector<16xf32>
    %10 = vector.shape_cast %9 : vector<16xf32> to vector<16x1xf32>
    %cst_4 = arith.constant 3.200000e+01 : f32
    %11 = vector.broadcast %cst_4 : f32 to vector<16x1xf32>
    %12 = arith.divf %10, %11 : vector<16x1xf32>
    %13 = vector.broadcast %5 : vector<16x1xf32> to vector<16x32xf32>
    %14 = arith.subf %1, %13 : vector<16x32xf32>
    %cst_5 = arith.constant 9.99999997E-7 : f32
    %15 = vector.broadcast %cst_5 : f32 to vector<16x1xf32>
    %16 = arith.addf %12, %15 : vector<16x1xf32>
    %17 = math.rsqrt %16 : vector<16x1xf32>
    %18 = vector.broadcast %17 : vector<16x1xf32> to vector<16x32xf32>
    %19 = arith.mulf %14, %18 : vector<16x32xf32>
    %c0_6 = arith.constant 0 : index
    %c0_7 = arith.constant 0 : index
    %20 = vector.load %arg2[%c0_6, %c0_7] : memref<1x32xf32, #tpu.memory_space<vmem>>, vector<1x32xf32>
    %21 = vector.shape_cast %20 : vector<1x32xf32> to vector<32xf32>
    %22 = vector.shape_cast %21 : vector<32xf32> to vector<1x32xf32>
    %23 = vector.broadcast %22 : vector<1x32xf32> to vector<16x32xf32>
    %24 = arith.mulf %19, %23 : vector<16x32xf32>
    %c0_8 = arith.constant 0 : index
    %c0_9 = arith.constant 0 : index
    %25 = vector.load %arg3[%c0_8, %c0_9] : memref<1x32xf32, #tpu.memory_space<vmem>>, vector<1x32xf32>
    %26 = vector.shape_cast %25 : vector<1x32xf32> to vector<32xf32>
    %27 = vector.shape_cast %26 : vector<32xf32> to vector<1x32xf32>
    %28 = vector.broadcast %27 : vector<1x32xf32> to vector<16x32xf32>
    %29 = arith.addf %24, %28 : vector<16x32xf32>
    %30 = arith.truncf %29 : vector<16x32xf32> to vector<16x32xbf16>
    %c0_10 = arith.constant 0 : index
    %c0_11 = arith.constant 0 : index
    %31 = vector.load %arg4[%c0_10, %c0_11] : memref<32x96xbf16, #tpu.memory_space<vmem>>, vector<32x96xbf16>
    %cst_12 = arith.constant dense<0.000000e+00> : vector<16x96xf32>
    %32 = tpu.matmul %30, %31, %cst_12 {dimension_numbers = #tpu.dot_dimension_numbers<[1], [0], [0], [1], [0, 0, 1, 1], [], []>} : vector<16x32xbf16>, vector<32x96xbf16>, vector<16x96xf32> -> vector<16x96xf32>
    %c0_13 = arith.constant 0 : index
    %c0_14 = arith.constant 0 : index
    %33 = vector.load %arg5[%c0_13, %c0_14] : memref<1x96xf32, #tpu.memory_space<vmem>>, vector<1x96xf32>
    %34 = vector.shape_cast %33 : vector<1x96xf32> to vector<96xf32>
    %35 = vector.shape_cast %34 : vector<96xf32> to vector<1x96xf32>
    %36 = vector.broadcast %35 : vector<1x96xf32> to vector<16x96xf32>
    %37 = arith.addf %32, %36 : vector<16x96xf32>
    %38 = vector.extract_strided_slice %37 {offsets = [0, 0], sizes = [16, 32], strides = [1, 1]} : vector<16x96xf32> to vector<16x32xf32>
    %39 = arith.truncf %38 : vector<16x32xf32> to vector<16x32xbf16>
    %40 = vector.extract_strided_slice %37 {offsets = [0, 32], sizes = [16, 32], strides = [1, 1]} : vector<16x96xf32> to vector<16x32xf32>
    %41 = arith.truncf %40 : vector<16x32xf32> to vector<16x32xbf16>
    %42 = vector.extract_strided_slice %37 {offsets = [0, 64], sizes = [16, 32], strides = [1, 1]} : vector<16x96xf32> to vector<16x32xf32>
    %43 = arith.truncf %42 : vector<16x32xf32> to vector<16x32xbf16>
    %44 = vector.extract_strided_slice %39 {offsets = [0, 0], sizes = [16, 8], strides = [1, 1]} : vector<16x32xbf16> to vector<16x8xbf16>
    %45 = vector.shape_cast %44 : vector<16x8xbf16> to vector<2x8x8xbf16>
    %46 = vector.extract_strided_slice %41 {offsets = [0, 0], sizes = [16, 8], strides = [1, 1]} : vector<16x32xbf16> to vector<16x8xbf16>
    %47 = vector.shape_cast %46 : vector<16x8xbf16> to vector<2x8x8xbf16>
    %48 = vector.extract_strided_slice %43 {offsets = [0, 0], sizes = [16, 8], strides = [1, 1]} : vector<16x32xbf16> to vector<16x8xbf16>
    %49 = vector.shape_cast %48 : vector<16x8xbf16> to vector<2x8x8xbf16>
    "tpu.trace_start"() <{level = 10 : i32, message = "bqd,bkd->bqk"}> : () -> ()
    %cst_15 = arith.constant dense<0.000000e+00> : vector<2x8x8xf32>
    %50 = tpu.matmul %45, %47, %cst_15 {dimension_numbers = #tpu.dot_dimension_numbers<[2], [2], [1], [1], [0, 0, 0, 1, 1, 1], [0], [0]>} : vector<2x8x8xbf16>, vector<2x8x8xbf16>, vector<2x8x8xf32> -> vector<2x8x8xf32>
    "tpu.trace_stop"() : () -> ()
    %cst_16 = arith.constant dense<0xFF800000> : vector<2x8xf32>
    %51 = vector.multi_reduction <maximumf>, %50, %cst_16 [2] : vector<2x8x8xf32> to vector<2x8xf32>
    %52 = vector.shape_cast %51 : vector<2x8xf32> to vector<2x8x1xf32>
    %53 = vector.broadcast %52 : vector<2x8x1xf32> to vector<2x8x8xf32>
    %54 = arith.subf %50, %53 : vector<2x8x8xf32>
    %55 = math.exp %54 : vector<2x8x8xf32>
    %cst_17 = arith.constant dense<0.000000e+00> : vector<2x8xf32>
    %56 = vector.multi_reduction <add>, %55, %cst_17 [2] : vector<2x8x8xf32> to vector<2x8xf32>
    %57 = vector.shape_cast %56 : vector<2x8xf32> to vector<2x8x1xf32>
    %58 = tpu.reciprocal %57 {approx = true} : vector<2x8x1xf32> -> vector<2x8x1xf32>
    %59 = vector.broadcast %58 : vector<2x8x1xf32> to vector<2x8x8xf32>
    %60 = arith.mulf %55, %59 : vector<2x8x8xf32>
    %61 = arith.truncf %60 : vector<2x8x8xf32> to vector<2x8x8xbf16>
    "tpu.trace_start"() <{level = 10 : i32, message = "bqk,bkd->bqd"}> : () -> ()
    %cst_18 = arith.constant dense<0.000000e+00> : vector<2x8x8xf32>
    %62 = tpu.matmul %61, %49, %cst_18 {dimension_numbers = #tpu.dot_dimension_numbers<[2], [1], [1], [2], [0, 0, 0, 1, 1, 2], [0], [0]>} : vector<2x8x8xbf16>, vector<2x8x8xbf16>, vector<2x8x8xf32> -> vector<2x8x8xf32>
    "tpu.trace_stop"() : () -> ()
    %63 = vector.shape_cast %62 : vector<2x8x8xf32> to vector<16x8xf32>
    %64 = arith.truncf %63 : vector<16x8xf32> to vector<16x8xbf16>
    %c0_19 = arith.constant 0 : index
    %c0_20 = arith.constant 0 : index
    %65 = vector.load %arg9[%c0_19, %c0_20] : memref<16x32xbf16, #tpu.memory_space<vmem>>, vector<16x8xbf16>
    tpu.vector_store %arg9[%c0_19, %c0_20], %64 {strides = array<i32>} : memref<16x32xbf16, #tpu.memory_space<vmem>>, vector<16x8xbf16>,
    %66 = vector.extract_strided_slice %39 {offsets = [0, 8], sizes = [16, 8], strides = [1, 1]} : vector<16x32xbf16> to vector<16x8xbf16>
    %67 = vector.shape_cast %66 : vector<16x8xbf16> to vector<2x8x8xbf16>
    %68 = vector.extract_strided_slice %41 {offsets = [0, 8], sizes = [16, 8], strides = [1, 1]} : vector<16x32xbf16> to vector<16x8xbf16>
    %69 = vector.shape_cast %68 : vector<16x8xbf16> to vector<2x8x8xbf16>
    %70 = vector.extract_strided_slice %43 {offsets = [0, 8], sizes = [16, 8], strides = [1, 1]} : vector<16x32xbf16> to vector<16x8xbf16>
    %71 = vector.shape_cast %70 : vector<16x8xbf16> to vector<2x8x8xbf16>
    "tpu.trace_start"() <{level = 10 : i32, message = "bqd,bkd->bqk"}> : () -> ()
    %cst_21 = arith.constant dense<0.000000e+00> : vector<2x8x8xf32>
    %72 = tpu.matmul %67, %69, %cst_21 {dimension_numbers = #tpu.dot_dimension_numbers<[2], [2], [1], [1], [0, 0, 0, 1, 1, 1], [0], [0]>} : vector<2x8x8xbf16>, vector<2x8x8xbf16>, vector<2x8x8xf32> -> vector<2x8x8xf32>
    "tpu.trace_stop"() : () -> ()
    %cst_22 = arith.constant dense<0xFF800000> : vector<2x8xf32>
    %73 = vector.multi_reduction <maximumf>, %72, %cst_22 [2] : vector<2x8x8xf32> to vector<2x8xf32>
    %74 = vector.shape_cast %73 : vector<2x8xf32> to vector<2x8x1xf32>
    %75 = vector.broadcast %74 : vector<2x8x1xf32> to vector<2x8x8xf32>
    %76 = arith.subf %72, %75 : vector<2x8x8xf32>
    %77 = math.exp %76 : vector<2x8x8xf32>
    %cst_23 = arith.constant dense<0.000000e+00> : vector<2x8xf32>
    %78 = vector.multi_reduction <add>, %77, %cst_23 [2] : vector<2x8x8xf32> to vector<2x8xf32>
    %79 = vector.shape_cast %78 : vector<2x8xf32> to vector<2x8x1xf32>
    %80 = tpu.reciprocal %79 {approx = true} : vector<2x8x1xf32> -> vector<2x8x1xf32>
    %81 = vector.broadcast %80 : vector<2x8x1xf32> to vector<2x8x8xf32>
    %82 = arith.mulf %77, %81 : vector<2x8x8xf32>
    %83 = arith.truncf %82 : vector<2x8x8xf32> to vector<2x8x8xbf16>
    "tpu.trace_start"() <{level = 10 : i32, message = "bqk,bkd->bqd"}> : () -> ()
    %cst_24 = arith.constant dense<0.000000e+00> : vector<2x8x8xf32>
    %84 = tpu.matmul %83, %71, %cst_24 {dimension_numbers = #tpu.dot_dimension_numbers<[2], [1], [1], [2], [0, 0, 0, 1, 1, 2], [0], [0]>} : vector<2x8x8xbf16>, vector<2x8x8xbf16>, vector<2x8x8xf32> -> vector<2x8x8xf32>
    "tpu.trace_stop"() : () -> ()
    %85 = vector.shape_cast %84 : vector<2x8x8xf32> to vector<16x8xf32>
    %86 = arith.truncf %85 : vector<16x8xf32> to vector<16x8xbf16>
    %c0_25 = arith.constant 0 : index
    %c8 = arith.constant 8 : index
    %87 = vector.load %arg9[%c0_25, %c8] : memref<16x32xbf16, #tpu.memory_space<vmem>>, vector<16x8xbf16>
    tpu.vector_store %arg9[%c0_25, %c8], %86 {strides = array<i32>} : memref<16x32xbf16, #tpu.memory_space<vmem>>, vector<16x8xbf16>,
    %88 = vector.extract_strided_slice %39 {offsets = [0, 16], sizes = [16, 8], strides = [1, 1]} : vector<16x32xbf16> to vector<16x8xbf16>
    %89 = vector.shape_cast %88 : vector<16x8xbf16> to vector<2x8x8xbf16>
    %90 = vector.extract_strided_slice %41 {offsets = [0, 16], sizes = [16, 8], strides = [1, 1]} : vector<16x32xbf16> to vector<16x8xbf16>
    %91 = vector.shape_cast %90 : vector<16x8xbf16> to vector<2x8x8xbf16>
    %92 = vector.extract_strided_slice %43 {offsets = [0, 16], sizes = [16, 8], strides = [1, 1]} : vector<16x32xbf16> to vector<16x8xbf16>
    %93 = vector.shape_cast %92 : vector<16x8xbf16> to vector<2x8x8xbf16>
    "tpu.trace_start"() <{level = 10 : i32, message = "bqd,bkd->bqk"}> : () -> ()
    %cst_26 = arith.constant dense<0.000000e+00> : vector<2x8x8xf32>
    %94 = tpu.matmul %89, %91, %cst_26 {dimension_numbers = #tpu.dot_dimension_numbers<[2], [2], [1], [1], [0, 0, 0, 1, 1, 1], [0], [0]>} : vector<2x8x8xbf16>, vector<2x8x8xbf16>, vector<2x8x8xf32> -> vector<2x8x8xf32>
    "tpu.trace_stop"() : () -> ()
    %cst_27 = arith.constant dense<0xFF800000> : vector<2x8xf32>
    %95 = vector.multi_reduction <maximumf>, %94, %cst_27 [2] : vector<2x8x8xf32> to vector<2x8xf32>
    %96 = vector.shape_cast %95 : vector<2x8xf32> to vector<2x8x1xf32>
    %97 = vector.broadcast %96 : vector<2x8x1xf32> to vector<2x8x8xf32>
    %98 = arith.subf %94, %97 : vector<2x8x8xf32>
    %99 = math.exp %98 : vector<2x8x8xf32>
    %cst_28 = arith.constant dense<0.000000e+00> : vector<2x8xf32>
    %100 = vector.multi_reduction <add>, %99, %cst_28 [2] : vector<2x8x8xf32> to vector<2x8xf32>
    %101 = vector.shape_cast %100 : vector<2x8xf32> to vector<2x8x1xf32>
    %102 = tpu.reciprocal %101 {approx = true} : vector<2x8x1xf32> -> vector<2x8x1xf32>
    %103 = vector.broadcast %102 : vector<2x8x1xf32> to vector<2x8x8xf32>
    %104 = arith.mulf %99, %103 : vector<2x8x8xf32>
    %105 = arith.truncf %104 : vector<2x8x8xf32> to vector<2x8x8xbf16>
    "tpu.trace_start"() <{level = 10 : i32, message = "bqk,bkd->bqd"}> : () -> ()
    %cst_29 = arith.constant dense<0.000000e+00> : vector<2x8x8xf32>
    %106 = tpu.matmul %105, %93, %cst_29 {dimension_numbers = #tpu.dot_dimension_numbers<[2], [1], [1], [2], [0, 0, 0, 1, 1, 2], [0], [0]>} : vector<2x8x8xbf16>, vector<2x8x8xbf16>, vector<2x8x8xf32> -> vector<2x8x8xf32>
    "tpu.trace_stop"() : () -> ()
    %107 = vector.shape_cast %106 : vector<2x8x8xf32> to vector<16x8xf32>
    %108 = arith.truncf %107 : vector<16x8xf32> to vector<16x8xbf16>
    %c0_30 = arith.constant 0 : index
    %c16 = arith.constant 16 : index
    %109 = vector.load %arg9[%c0_30, %c16] : memref<16x32xbf16, #tpu.memory_space<vmem>>, vector<16x8xbf16>
    tpu.vector_store %arg9[%c0_30, %c16], %108 {strides = array<i32>} : memref<16x32xbf16, #tpu.memory_space<vmem>>, vector<16x8xbf16>,
    %110 = vector.extract_strided_slice %39 {offsets = [0, 24], sizes = [16, 8], strides = [1, 1]} : vector<16x32xbf16> to vector<16x8xbf16>
    %111 = vector.shape_cast %110 : vector<16x8xbf16> to vector<2x8x8xbf16>
    %112 = vector.extract_strided_slice %41 {offsets = [0, 24], sizes = [16, 8], strides = [1, 1]} : vector<16x32xbf16> to vector<16x8xbf16>
    %113 = vector.shape_cast %112 : vector<16x8xbf16> to vector<2x8x8xbf16>
    %114 = vector.extract_strided_slice %43 {offsets = [0, 24], sizes = [16, 8], strides = [1, 1]} : vector<16x32xbf16> to vector<16x8xbf16>
    %115 = vector.shape_cast %114 : vector<16x8xbf16> to vector<2x8x8xbf16>
    "tpu.trace_start"() <{level = 10 : i32, message = "bqd,bkd->bqk"}> : () -> ()
    %cst_31 = arith.constant dense<0.000000e+00> : vector<2x8x8xf32>
    %116 = tpu.matmul %111, %113, %cst_31 {dimension_numbers = #tpu.dot_dimension_numbers<[2], [2], [1], [1], [0, 0, 0, 1, 1, 1], [0], [0]>} : vector<2x8x8xbf16>, vector<2x8x8xbf16>, vector<2x8x8xf32> -> vector<2x8x8xf32>
    "tpu.trace_stop"() : () -> ()
    %cst_32 = arith.constant dense<0xFF800000> : vector<2x8xf32>
    %117 = vector.multi_reduction <maximumf>, %116, %cst_32 [2] : vector<2x8x8xf32> to vector<2x8xf32>
    %118 = vector.shape_cast %117 : vector<2x8xf32> to vector<2x8x1xf32>
    %119 = vector.broadcast %118 : vector<2x8x1xf32> to vector<2x8x8xf32>
    %120 = arith.subf %116, %119 : vector<2x8x8xf32>
    %121 = math.exp %120 : vector<2x8x8xf32>
    %cst_33 = arith.constant dense<0.000000e+00> : vector<2x8xf32>
    %122 = vector.multi_reduction <add>, %121, %cst_33 [2] : vector<2x8x8xf32> to vector<2x8xf32>
    %123 = vector.shape_cast %122 : vector<2x8xf32> to vector<2x8x1xf32>
    %124 = tpu.reciprocal %123 {approx = true} : vector<2x8x1xf32> -> vector<2x8x1xf32>
    %125 = vector.broadcast %124 : vector<2x8x1xf32> to vector<2x8x8xf32>
    %126 = arith.mulf %121, %125 : vector<2x8x8xf32>
    %127 = arith.truncf %126 : vector<2x8x8xf32> to vector<2x8x8xbf16>
    "tpu.trace_start"() <{level = 10 : i32, message = "bqk,bkd->bqd"}> : () -> ()
    %cst_34 = arith.constant dense<0.000000e+00> : vector<2x8x8xf32>
    %128 = tpu.matmul %127, %115, %cst_34 {dimension_numbers = #tpu.dot_dimension_numbers<[2], [1], [1], [2], [0, 0, 0, 1, 1, 2], [0], [0]>} : vector<2x8x8xbf16>, vector<2x8x8xbf16>, vector<2x8x8xf32> -> vector<2x8x8xf32>
    "tpu.trace_stop"() : () -> ()
    %129 = vector.shape_cast %128 : vector<2x8x8xf32> to vector<16x8xf32>
    %130 = arith.truncf %129 : vector<16x8xf32> to vector<16x8xbf16>
    %c0_35 = arith.constant 0 : index
    %c24 = arith.constant 24 : index
    %131 = vector.load %arg9[%c0_35, %c24] : memref<16x32xbf16, #tpu.memory_space<vmem>>, vector<16x8xbf16>
    tpu.vector_store %arg9[%c0_35, %c24], %130 {strides = array<i32>} : memref<16x32xbf16, #tpu.memory_space<vmem>>, vector<16x8xbf16>,
    %c0_36 = arith.constant 0 : index
    %c0_37 = arith.constant 0 : index
    %132 = vector.load %arg9[%c0_36, %c0_37] : memref<16x32xbf16, #tpu.memory_space<vmem>>, vector<16x32xbf16>
    %c0_38 = arith.constant 0 : index
    %c0_39 = arith.constant 0 : index
    %133 = vector.load %arg6[%c0_38, %c0_39] : memref<32x32xbf16, #tpu.memory_space<vmem>>, vector<32x32xbf16>
    %cst_40 = arith.constant dense<0.000000e+00> : vector<16x32xf32>
    %134 = tpu.matmul %132, %133, %cst_40 {dimension_numbers = #tpu.dot_dimension_numbers<[1], [0], [0], [1], [0, 0, 1, 1], [], []>} : vector<16x32xbf16>, vector<32x32xbf16>, vector<16x32xf32> -> vector<16x32xf32>
    %c0_41 = arith.constant 0 : index
    %c0_42 = arith.constant 0 : index
    %135 = vector.load %arg7[%c0_41, %c0_42] : memref<1x32xf32, #tpu.memory_space<vmem>>, vector<1x32xf32>
    %136 = vector.shape_cast %135 : vector<1x32xf32> to vector<32xf32>
    %137 = vector.shape_cast %136 : vector<32xf32> to vector<1x32xf32>
    %138 = vector.broadcast %137 : vector<1x32xf32> to vector<16x32xf32>
    %139 = arith.addf %134, %138 : vector<16x32xf32>
    %140 = arith.addf %1, %139 : vector<16x32xf32>
    %141 = vector.shape_cast %140 : vector<16x32xf32> to vector<2x8x32xf32>
    %c0_43 = arith.constant 0 : index
    %c0_44 = arith.constant 0 : index
    %c0_45 = arith.constant 0 : index
    %142 = vector.load %arg8[%c0_43, %c0_44, %c0_45] : memref<2x8x32xf32, #tpu.memory_space<vmem>>, vector<2x8x32xf32>
    tpu.vector_store %arg8[%c0_43, %c0_44, %c0_45], %141 {strides = array<i32>} : memref<2x8x32xf32, #tpu.memory_space<vmem>>, vector<2x8x32xf32>,
    return
  }
  func.func @transform_0(%arg0: i32) -> (i32, i32, i32) {
    %c0_i32 = arith.constant 0 : i32
    %c0_i32_0 = arith.constant 0 : i32
    %c0_i32_1 = arith.constant 0 : i32
    return %arg0, %c0_i32, %c0_i32_0 : i32, i32, i32
  }
  func.func @transform_1(%arg0: i32) -> (i32, i32) {
    %c0_i32 = arith.constant 0 : i32
    %c0_i32_0 = arith.constant 0 : i32
    %c0_i32_1 = arith.constant 0 : i32
    return %c0_i32, %c0_i32_0 : i32, i32
  }
  func.func @transform_2(%arg0: i32) -> (i32, i32) {
    %c0_i32 = arith.constant 0 : i32
    %c0_i32_0 = arith.constant 0 : i32
    %c0_i32_1 = arith.constant 0 : i32
    return %c0_i32, %c0_i32_0 : i32, i32
  }
  func.func @transform_3(%arg0: i32) -> (i32, i32) {
    %c0_i32 = arith.constant 0 : i32
    %c0_i32_0 = arith.constant 0 : i32
    %c0_i32_1 = arith.constant 0 : i32
    return %c0_i32, %c0_i32_0 : i32, i32
  }
  func.func @transform_4(%arg0: i32) -> (i32, i32) {
    %c0_i32 = arith.constant 0 : i32
    %c0_i32_0 = arith.constant 0 : i32
    %c0_i32_1 = arith.constant 0 : i32
    return %c0_i32, %c0_i32_0 : i32, i32
  }
  func.func @transform_5(%arg0: i32) -> (i32, i32) {
    %c0_i32 = arith.constant 0 : i32
    %c0_i32_0 = arith.constant 0 : i32
    %c0_i32_1 = arith.constant 0 : i32
    return %c0_i32, %c0_i32_0 : i32, i32
  }
  func.func @transform_6(%arg0: i32) -> (i32, i32) {
    %c0_i32 = arith.constant 0 : i32
    %c0_i32_0 = arith.constant 0 : i32
    %c0_i32_1 = arith.constant 0 : i32
    return %c0_i32, %c0_i32_0 : i32, i32
  }
  func.func @transform_7(%arg0: i32) -> (i32, i32, i32) {
    %c0_i32 = arith.constant 0 : i32
    %c0_i32_0 = arith.constant 0 : i32
    %c0_i32_1 = arith.constant 0 : i32
    return %arg0, %c0_i32, %c0_i32_0 : i32, i32, i32
  }
}

</mosaic_0001>

<bundles_post_ra>
// kernel: tpu_custom_call.1
= control target key start
LH: loop header
LB: loop body
LE: loop exit
PB: predicated region body
PF: predicated region fallthrough
CT: control target
= control target key end

     0   :  { %12 = vsyncpa [#allocation4], 0  ;;  %s1812_s0 = inlined_call_operand.hbm [shape: f32[2,8,32], index: 0, kind: input, shape index: {}]   ;;  %s1813_s1 = inlined_call_operand.vmem [shape: f32[1,32], index: 1, kind: input, shape index: {}]   ;;  %s1814_s2 = inlined_call_operand.vmem [shape: f32[1,32], index: 2, kind: input, shape index: {}]   ;;  %s1815_s3 = inlined_call_operand.hbm [shape: bf16[32,96], index: 3, kind: input, shape index: {}]   ;;  %s1816_s4 = inlined_call_operand.hbm [shape: f32[1,96], index: 4, kind: input, shape index: {}]   ;;  %s1817_s5 = inlined_call_operand.vmem [shape: bf16[32,32], index: 5, kind: input, shape index: {}]   ;;  %s1818_s6 = inlined_call_operand.vmem [shape: f32[1,32], index: 6, kind: input, shape index: {}]   ;;  %s1819_s7 = inlined_call_operand.hbm [shape: f32[2,8,32], index: 7, kind: output, shape index: {}]  }
   0x1   :  { %13 = vsyncpa [#allocation7], 0 }
   0x2   :  { %14 = vsyncpa [#allocation5], 0  ;;  %s1516_s24 = smov [#allocation6]   ;;  %s1422_s28 = scalar_lea.hbm %s1815_s3, 256 }
   0x3   :  { %s36_s25 = sshll.u32 %s1516_s24, 4  ;;  %p1423_p0 = scmp.ne.s32.totalorder %s1815_s3, %s1422_s28  ;;  %s37_s25 = int_to_ptr.vmem [resolvable:$true] %s36_s25 }
   0x4   :  { %p1426_p1 = scmp.lt.u32.totalorder %s1422_s28, %s1815_s3 }
   0x6   :  { %p1428_p2 = pnand %p1426_p1, %p1423_p0 }
   0x8   :  { %1431 = shalt.err (!%p1428_p2)
}
   0x9   :  { %s1432_s10 = scalar_lea.vmem %s37_s25, 256  ;;  %p1437_p4 = scmp.lt.s32.totalorder %s37_s25, %s37_s25 }
   0xa   :  { %p1433_p3 = scmp.ne.s32.totalorder %s37_s25, %s1432_s10  ;;  %p1438_p5 = scmp.lt.s32.totalorder %s1432_s10, %s1432_s10 }
   0xc   :  { %p1439_p6 = por %p1438_p5, %p1437_p4 }
   0xe   :  { %p1440_p7 = pnand %p1439_p6, %p1433_p3 }
  0x10   :  { %1443 = shalt.err (!%p1440_p7)
}
  0x11   :  { %s1517_s11 = smov 64   ;;  %s1518_s12 = smov 4  }
  0x12   :  { %42 = dma.hbm_to_vmem [thread:$0]  %s1815_s3, 256, %s37_s25, [#allocation7], %s1517_s11, %s1517_s11, %s1518_s12  }
  0x13   :  { %s1519_s15 = smov [#allocation3]   ;;  %s1444_s19 = scalar_lea.hbm %s1812_s0, 256 }
  0x14   :  { %s20_s16 = sshll.u32 %s1519_s15, 4  ;;  %p1445_p8 = scmp.ne.s32.totalorder %s1812_s0, %s1444_s19  ;;  %s21_s16 = int_to_ptr.vmem [resolvable:$true] %s20_s16 }
  0x15   :  { %p1448_p9 = scmp.lt.u32.totalorder %s1444_s19, %s1812_s0 }
  0x17   :  { %p1450_p10 = pnand %p1448_p9, %p1445_p8 }
  0x19   :  { %1453 = shalt.err (!%p1450_p10)
}
  0x1a   :  { %s1454_s24 = scalar_lea.vmem %s21_s16, 256  ;;  %p1459_p12 = scmp.lt.s32.totalorder %s21_s16, %s21_s16 }
  0x1b   :  { %p1455_p11 = scmp.ne.s32.totalorder %s21_s16, %s1454_s24  ;;  %p1460_p13 = scmp.lt.s32.totalorder %s1454_s24, %s1454_s24 }
  0x1d   :  { %p1461_p0 = por %p1460_p13, %p1459_p12 }
  0x1f   :  { %p1462_p1 = pnand %p1461_p0, %p1455_p11 }
  0x21   :  { %1465 = shalt.err (!%p1462_p1)
}
  0x22   :  { %s1520_s3 = smov 128   ;;  %s1521_s25 = smov 8  }
  0x23   :  { %26 = dma.hbm_to_vmem [thread:$0]  %s1812_s0, 256, %s21_s16, [#allocation4], %s1520_s3, %s1520_s3, %s1521_s25  }
  0x24   :  { %s1522_s28 = smov [#allocation8]   ;;  %s1466_s9 = scalar_lea.hbm %s1816_s4, 16 }
  0x25   :  { %s49_s29 = sshll.u32 %s1522_s28, 4  ;;  %p1467_p2 = scmp.ne.s32.totalorder %s1816_s4, %s1466_s9  ;;  %s50_s29 = int_to_ptr.vmem [resolvable:$true] %s49_s29 }
  0x26   :  { %p1470_p3 = scmp.lt.u32.totalorder %s1466_s9, %s1816_s4 }
  0x28   :  { %p1472_p4 = pnand %p1470_p3, %p1467_p2 }
  0x2a   :  { %1475 = shalt.err (!%p1472_p4)
}
  0x2b   :  { %s1476_s15 = scalar_lea.vmem %s50_s29, 16  ;;  %s1480_s0 = scalar_lea.vmem %s50_s29, 32 }
  0x2c   :  { %p1477_p5 = scmp.ne.s32.totalorder %s50_s29, %s1476_s15  ;;  %p1481_p6 = scmp.lt.s32.totalorder %s50_s29, %s50_s29 }
  0x2d   :  { %p1482_p7 = scmp.lt.s32.totalorder %s1480_s0, %s1476_s15 }
  0x2f   :  { %p1483_p8 = por %p1482_p7, %p1481_p6 }
  0x31   :  { %p1484_p9 = pnand %p1483_p8, %p1477_p5 }
  0x33   :  { %1487 = shalt.err (!%p1484_p9)
}
  0x34   :  { %52 = dma.hbm_to_vmem [thread:$0]  %s1816_s4, 16, %s50_s29, [#allocation7]  }
  0x35   :  { %1510 = dma.done.wait [#allocation4], 256  }
  0x36   :  { %1511 = vsyncadd [#allocation4], 4294967040 }
  0x37   :  { %1512 = dma.done.wait [#allocation7], 272  }
  0x38   :  { %1513 = vsyncadd [#allocation7], 4294967024  ;;  %vm69_vm0 = vcmask 261120   ;;  %v1619_v0 = vld [vmem:[#allocation3] sm:$0xff]  ;;  %v1621_v1 = vld [vmem:[#allocation3 + $0x8] sm:$0xff]  ;;  %v1523_v15 = vmov 0.0  }
  0x39   :  { %v70_v2 = vsel %vm69_vm0, %v1619_v0, 0.0  ;;  %v73_v3 = vsel %vm69_vm0, %v1621_v1, 0.0  ;;  %v1382_v14 = vld [vmem:[#allocation6] sm:$0xff]   ;;  %1248 = vmatprep.subr.bf16.mxu0 %v1523_v15  ;;  %1256 = vmatprep.subr.bf16.mxu1 %v1523_v15  ;;  %v1383_v16 = vld [vmem:[#allocation6 + $0x8] sm:$0xff]   ;;  %vm1524_vm1 = vmmov 0   ;;  %vm191_vm2 = vcmask 64512  }
  0x3a   :  { %71 = vadd.xlane.f32.xlu0 %v70_v2  ;;  %1249 = vmatpush3.bf16.msra.mxu0 %v1382_v14  ;;  %v1180_v25 = vld [vmem:[%s1813_s1] ss:$0 sm:$0xff]  ;;  %v1182_v34 = vld [vmem:[#allocation8] ss:$0 sm:$0xff]  ;;  %s1525_s1 = smov 96   ;;  %vm315_vm3 = vcmask 1043456  }
  0x3b   :  { %1252 = vmatprep.mubr.msk.bf16.mxu0 %vm1524_vm1, %v1523_v15  ;;  %1250 = vmatprep.subr.bf16.mxu0 %v1523_v15  ;;  %v1181_v29 = vld [vmem:[%s1814_s2] ss:$0 sm:$0xff]  ;;  %s1526_s2 = smov 88   ;;  %s1527_s21 = smov 120   ;;  %vm634_vm4 = vcmask 130112   ;;  %vm861_vm5 = vcmask 195712  }
  0x3c   :  { %1258 = vmatprep.mubr.msk.bf16.mxu1 %vm1524_vm1, %v1523_v15  ;;  %s1529_s22 = smov 80   ;;  %s1530_s23 = smov 112   ;;  %vm1088_vm6 = vcmask 261312  }
  0x3d   :  { %s1531_s24 = smov 48   ;;  %s1532_s26 = smov 72  }
  0x3e   :  { %74 = vadd.xlane.f32.xlu0 %v73_v3  ;;  %1251 = vmatpush3.bf16.msra.mxu0 %v1383_v16  ;;  %s1533_s27 = smov 104   ;;  %s1534_s28 = smov 40  }
  0x3f   :  { %1262 = vmatprep.subr.bf16.mxu0 %v1523_v15  ;;  %s1535_s29 = smov 16   ;;  %s1536_s12 = smov 24  }
  0x40   :  { %s1537_s14 = smov [#allocation9]  }
  0x41   :  { %s1167_s15 = sshll.u32 %s1537_s14, 4  ;;  %s1168_s15 = int_to_ptr.vmem [resolvable:$true] %s1167_s15 }
  0x42   :  { %s1488_s0 = scalar_lea.vmem %s1168_s15, 256  ;;  %p1493_p11 = scmp.lt.s32.totalorder %s1168_s15, %s1168_s15 }
  0x43   :  { %p1489_p10 = scmp.ne.s32.totalorder %s1168_s15, %s1488_s0  ;;  %p1494_p12 = scmp.lt.s32.totalorder %s1488_s0, %s1488_s0 }
  0x45   :  { %p1495_p13 = por %p1494_p12, %p1493_p11 }
  0x47   :  { %p1496_p0 = pnand %p1495_p13, %p1489_p10 }
  0xc7   :  { %v72_v4 = vpop.xlane.xlu0 %71 }
  0xc8   :  { %v77_v5 = vmul.f32 0.03125, %v72_v4 }
  0xca   :  { %v79_v6 = vsub.f32 %v1619_v0, %v77_v5 }
  0xcb   :  { %v75_v7 = vpop.xlane.xlu0 %74 }
  0xcc   :  { %v78_v8 = vmul.f32 0.03125, %v75_v7  ;;  %v81_v9 = vmul.f32 %v79_v6, %v79_v6 }
  0xce   :  { %v80_v10 = vsub.f32 %v1621_v1, %v78_v8  ;;  %v83_v11 = vsel %vm69_vm0, %v81_v9, 0.0 }
  0xcf   :  { %84 = vadd.xlane.f32.xlu1 %v83_v11 }
  0xd0   :  { %v82_v12 = vmul.f32 %v80_v10, %v80_v10 }
  0xd2   :  { %v86_v13 = vsel %vm69_vm0, %v82_v12, 0.0 }
  0xd3   :  { %87 = vadd.xlane.f32.xlu1 %v86_v13 }
 0x15c   :  { %v85_v17 = vpop.xlane.xlu1 %84 }
 0x15d   :  { %v89_v18 = vmul.f32 0.03125, %v85_v17 }
 0x15f   :  { %v91_v19 = vadd.f32 1e-06, %v89_v18 }
 0x160   :  { %v88_v20 = vpop.xlane.xlu1 %87 }
 0x161   :  { %1386 = vrsqrt.f32 %v91_v19  ;;  %v90_v21 = vmul.f32 0.03125, %v88_v20 }
 0x163   :  { %v92_v22 = vadd.f32 1e-06, %v90_v21 }
 0x165   :  { %1388 = vrsqrt.f32 %v92_v22 }
 0x16b   :  { %v1387_v23 = vpop.eup %1386 }
 0x16c   :  { %v95_v24 = vmul.f32 %v1387_v23, %v79_v6 }
 0x16e   :  { %v104_v28 = vmul.f32 %v1180_v25, %v95_v24 }
 0x16f   :  { %v1389_v26 = vpop.eup %1388 }
 0x170   :  { %v96_v27 = vmul.f32 %v1389_v26, %v80_v10  ;;  %v113_v31 = vadd.f32 %v1181_v29, %v104_v28 }
 0x172   :  { %v105_v30 = vmul.f32 %v1180_v25, %v96_v27 }
 0x174   :  { %v114_v32 = vadd.f32 %v1181_v29, %v105_v30 }
 0x176   :  { %v115_v33 = vpack.c.bf16 %v114_v32, %v113_v31 }
 0x178   :  { %1253 = vmatmul.mubr.msk.bf16.vlgmr.msra.gmra.mrb[0].mxu0 %vm69_vm0, %v115_v33 }
 0x179   :  { %1264 = vmatprep.mubr.msk.bf16.mxu0 %vm1524_vm1, %v1523_v15 }
 0x24b   :  { %v176_v35 = vpop.f32.mrb[0].mxu0 }
 0x24c   :  { %v177_v36 = vadd.f32 %v1182_v34, %v176_v35  ;;  %v1254_v37 = vpop.f32.mrb[1].mxu0 }
 0x24d   :  { %v179_v38 = vpop.f32.mrb[2].mxu0 }
 0x24e   :  { %v1648_v39 = vpack.c.bf16 %v177_v36, %v177_v36  ;;  %v180_v40 = vadd.f32 %v1182_v34, %v179_v38  ;;  %v1255_v41 = vpop.f32.mrb[3].mxu0 }
 0x250   :  { %v1650_v42 = vpack.c.bf16 %v180_v40, %v180_v40  ;;  %189 = vrot.lane.b32.xlu0 %v1648_v39, %s1525_s1 }
 0x252   :  { %238 = vrot.lane.b32.xlu1 %v1650_v42, %s1525_s1 }
 0x2c2   :  { %v190_v43 = vpop.permute.xlu0 %189 }
 0x2c3   :  { %v196_v44 = vsel %vm191_vm2, %v190_v43, 0 }
 0x2c4   :  { %1257 = vmatpush3.bf16.xpose.msra.mxu1 %v196_v44  ;;  %v239_v45 = vpop.permute.xlu1 %238 }
 0x2c5   :  { %v244_v46 = vsel %vm191_vm2, %v239_v45, 0  ;;  %1268 = vmatprep.subr.bf16.mxu1 %v1523_v15 }
 0x2c6   :  { %1263 = vmatpush3.bf16.xpose.msra.mxu0 %v244_v46 }
 0x2c7   :  { %1274 = vmatprep.subr.bf16.mxu0 %v1523_v15 }
 0x2cb   :  { %1259 = vmatmul.mubr.msk.bf16.vlgmr.msra.gmra.mrb[0].mxu1 %vm191_vm2, %v1648_v39 }
 0x2cc   :  { %1270 = vmatprep.mubr.msk.bf16.mxu1 %vm1524_vm1, %v1523_v15 }
 0x2cd   :  { %1265 = vmatmul.mubr.msk.bf16.vlgmr.msra.gmra.mrb[4].mxu0 %vm191_vm2, %v1650_v42 }
 0x2ce   :  { %1276 = vmatprep.mubr.msk.bf16.mxu0 %vm1524_vm1, %v1523_v15 }
 0x39e   :  { %v232_v47 = vpop.f32.mrb[0].mxu1 }
 0x39f   :  { %v1260_v48 = vpop.f32.mrb[1].mxu1  ;;  %v286_v49 = vsel %vm191_vm2, %v232_v47, -inf }
 0x3a0   :  { %v235_v50 = vpop.f32.mrb[2].mxu1  ;;  %287 = vmax.xlane.f32.xlu1 %v286_v49  ;;  %v280_v51 = vpop.f32.mrb[4].mxu0 }
 0x3a1   :  { %v1261_v52 = vpop.f32.mrb[3].mxu1  ;;  %v1266_v53 = vpop.f32.mrb[5].mxu0  ;;  %v289_v54 = vsel %vm191_vm2, %v280_v51, -inf }
 0x3a2   :  { %290 = vmax.xlane.f32.xlu0 %v289_v54  ;;  %v283_v55 = vpop.f32.mrb[6].mxu0 }
 0x3a3   :  { %v1267_v56 = vpop.f32.mrb[7].mxu0 }
 0x3b1   :  { %359 = vrot.lane.b32.xlu1 %v1650_v42, %s1517_s11 }
 0x3b5   :  { %411 = vrot.lane.b32.xlu1 %v1648_v39, %s1526_s2 }
 0x42d   :  { %v288_v57 = vpop.xlane.xlu1 %287 }
 0x42e   :  { %v292_v58 = vsub.f32 %v232_v47, %v288_v57 }
 0x42f   :  { %v291_v59 = vpop.xlane.xlu0 %290 }
 0x430   :  { %v294_v60 = vmul.f32 1.442695, %v292_v58  ;;  %v293_v61 = vsub.f32 %v280_v51, %v291_v59 }
 0x431   :  { %v360_v62 = vpop.permute.xlu1 %359 }
 0x432   :  { %1390 = vpow2.f32 %v294_v60  ;;  %v296_v63 = vmul.f32 1.442695, %v293_v61  ;;  %v365_v2 = vsel %vm315_vm3, %v360_v62, 0 }
 0x433   :  { %1275 = vmatpush3.bf16.msra.mxu0 %v365_v2 }
 0x434   :  { %1392 = vpow2.f32 %v296_v63  ;;  %1286 = vmatprep.subr.bf16.mxu0 %v1523_v15 }
 0x435   :  { %v412_v7 = vpop.permute.xlu1 %411 }
 0x436   :  { %v417_v19 = vsel %vm191_vm2, %v412_v7, 0 }
 0x43c   :  { %v1391_v3 = vpop.eup %1390 }
 0x43d   :  { %v298_v4 = vsel %vm191_vm2, %v1391_v3, 0.0 }
 0x43e   :  { %v1393_v5 = vpop.eup %1392  ;;  %299 = vadd.xlane.f32.xlu0 %v298_v4 }
 0x43f   :  { %v301_v6 = vsel %vm191_vm2, %v1393_v5, 0.0 }
 0x440   :  { %302 = vadd.xlane.f32.xlu1 %v301_v6 }
 0x451   :  { %461 = vrot.lane.b32.xlu1 %v1650_v42, %s1526_s2 }
 0x454   :  { %310 = vrot.lane.b32.xlu0 %v1648_v39, %s1517_s11  ;;  %s1528_s11 = smov 56  }
 0x455   :  { %459 = vrot.lane.b32.xlu1 %v1650_v42, %s1527_s21 }
 0x458   :  { %409 = vrot.lane.b32.xlu0 %v1648_v39, %s1527_s21 }
 0x4cb   :  { %v300_v8 = vpop.xlane.xlu0 %299 }
 0x4cc   :  { %1394 = vrcp.f32 %v300_v8 }
 0x4cd   :  { %v303_v9 = vpop.xlane.xlu1 %302 }
 0x4ce   :  { %1396 = vrcp.f32 %v303_v9 }
 0x4cf   :  { %v311_v10 = vpop.permute.xlu0 %310 }
 0x4d0   :  { %v317_v11 = vsel %vm315_vm3, %v311_v10, 0 }
 0x4d1   :  { %1269 = vmatpush3.bf16.msra.mxu1 %v317_v11  ;;  %v462_v18 = vpop.permute.xlu1 %461 }
 0x4d2   :  { %1280 = vmatprep.subr.bf16.mxu1 %v1523_v15  ;;  %v467_v21 = vsel %vm191_vm2, %v462_v18, 0 }
 0x4d3   :  { %v410_v22 = vpop.permute.xlu0 %409 }
 0x4d5   :  { %v460_v23 = vpop.permute.xlu1 %459 }
 0x4d6   :  { %v1395_v12 = vpop.eup %1394 }
 0x4d7   :  { %v306_v13 = vmul.f32 %v1395_v12, %v1391_v3 }
 0x4d8   :  { %v1397_v14 = vpop.eup %1396 }
 0x4d9   :  { %v307_v16 = vmul.f32 %v1397_v14, %v1393_v5  ;;  %v308_v17 = vpack.c.bf16 %v306_v13, %v306_v13 }
 0x4db   :  { %1271 = vmatmul.mubr.msk.bf16.vlgmr.msra.gmra.mrb[4].mxu1 %vm191_vm2, %v308_v17  ;;  %v309_v20 = vpack.c.bf16 %v307_v16, %v307_v16 }
 0x4dc   :  { %1281 = vmatpush3.bf16.xpose.msra.mxu1 %v417_v19  ;;  %1282 = vmatprep.mubr.msk.bf16.mxu1 %vm1524_vm1, %v1523_v15 }
 0x4dd   :  { %1277 = vmatmul.mubr.msk.bf16.vlgmr.msra.gmra.mrb[8].mxu0 %vm191_vm2, %v309_v20  ;;  %1292 = vmatprep.subr.bf16.mxu1 %v1523_v15 }
 0x4de   :  { %1287 = vmatpush3.bf16.xpose.msra.mxu0 %v467_v21  ;;  %1288 = vmatprep.mubr.msk.bf16.mxu0 %vm1524_vm1, %v1523_v15 }
 0x4df   :  { %1298 = vmatprep.subr.bf16.mxu0 %v1523_v15 }
 0x4e3   :  { %1283 = vmatmul.mubr.msk.bf16.vlgmr.msra.gmra.mrb[8].mxu1 %vm191_vm2, %v410_v22 }
 0x4e4   :  { %1294 = vmatprep.mubr.msk.bf16.mxu1 %vm1524_vm1, %v1523_v15 }
 0x4e5   :  { %1289 = vmatmul.mubr.msk.bf16.vlgmr.msra.gmra.mrb[12].mxu0 %vm191_vm2, %v460_v23 }
 0x4e6   :  { %1300 = vmatprep.mubr.msk.bf16.mxu0 %vm1524_vm1, %v1523_v15 }
 0x5ae   :  { %v353_v24 = vpop.f32.mrb[4].mxu1 }
 0x5af   :  { %v1272_v25 = vpop.f32.mrb[5].mxu1 }
 0x5b0   :  { %v356_v26 = vpop.f32.mrb[6].mxu1  ;;  %v401_v27 = vpop.f32.mrb[8].mxu0 }
 0x5b1   :  { %v407_v28 = vpack.c.bf16 %v401_v27, %v353_v24  ;;  %v1273_v29 = vpop.f32.mrb[7].mxu1  ;;  %v1278_v30 = vpop.f32.mrb[9].mxu0 }
 0x5b2   :  { %v404_v31 = vpop.f32.mrb[10].mxu0 }
 0x5b3   :  { %408 = vst.msk [vmem:[#allocation2] sm:$0xff] %vm191_vm2, %v407_v28  ;;  %v1279_v32 = vpop.f32.mrb[11].mxu0 }
 0x5b6   :  { %v453_v33 = vpop.f32.mrb[8].mxu1 }
 0x5b7   :  { %v1284_v34 = vpop.f32.mrb[9].mxu1  ;;  %v509_v35 = vsel %vm191_vm2, %v453_v33, -inf }
 0x5b8   :  { %510 = vmax.xlane.f32.xlu0 %v509_v35  ;;  %v456_v36 = vpop.f32.mrb[10].mxu1  ;;  %v503_v37 = vpop.f32.mrb[12].mxu0 }
 0x5b9   :  { %v1285_v38 = vpop.f32.mrb[11].mxu1  ;;  %v1290_v40 = vpop.f32.mrb[13].mxu0  ;;  %v512_v41 = vsel %vm191_vm2, %v503_v37, -inf }
 0x5ba   :  { %513 = vmax.xlane.f32.xlu1 %v512_v41  ;;  %v506_v43 = vpop.f32.mrb[14].mxu0 }
 0x5bb   :  { %v1291_v44 = vpop.f32.mrb[15].mxu0 }
 0x5cb   :  { %581 = vrot.lane.b32.xlu1 %v1650_v42, %s1528_s11 }
 0x5cf   :  { %638 = vrot.lane.b32.xlu1 %v1648_v39, %s1529_s22 }
 0x5d3   :  { %688 = vrot.lane.b32.xlu1 %v1650_v42, %s1529_s22 }
 0x5d7   :  { %686 = vrot.lane.b32.xlu1 %v1650_v42, %s1530_s23 }
 0x645   :  { %v511_v45 = vpop.xlane.xlu0 %510 }
 0x646   :  { %v515_v46 = vsub.f32 %v453_v33, %v511_v45 }
 0x647   :  { %v514_v47 = vpop.xlane.xlu1 %513 }
 0x648   :  { %v517_v48 = vmul.f32 1.442695, %v515_v46  ;;  %v516_v49 = vsub.f32 %v503_v37, %v514_v47 }
 0x64a   :  { %1398 = vpow2.f32 %v517_v48  ;;  %v519_v50 = vmul.f32 1.442695, %v516_v49 }
 0x64b   :  { %v582_v51 = vpop.permute.xlu1 %581 }
 0x64c   :  { %1400 = vpow2.f32 %v519_v50  ;;  %v587_v52 = vsel %vm315_vm3, %v582_v51, 0 }
 0x64d   :  { %1299 = vmatpush3.bf16.msra.mxu0 %v587_v52 }
 0x64e   :  { %1310 = vmatprep.subr.bf16.mxu0 %v1523_v15 }
 0x64f   :  { %v639_v62 = vpop.permute.xlu1 %638 }
 0x650   :  { %v644_v6 = vsel %vm191_vm2, %v639_v62, 0 }
 0x653   :  { %v689_v5 = vpop.permute.xlu1 %688 }
 0x654   :  { %v1399_v53 = vpop.eup %1398  ;;  %v694_v8 = vsel %vm191_vm2, %v689_v5, 0 }
 0x655   :  { %v521_v54 = vsel %vm191_vm2, %v1399_v53, 0.0 }
 0x656   :  { %v1401_v55 = vpop.eup %1400  ;;  %522 = vadd.xlane.f32.xlu0 %v521_v54 }
 0x657   :  { %v524_v56 = vsel %vm191_vm2, %v1401_v55, 0.0  ;;  %v687_v10 = vpop.permute.xlu1 %686 }
 0x65a   :  { %525 = vadd.xlane.f32.xlu0 %v524_v56 }
 0x670   :  { %533 = vrot.lane.b32.xlu0 %v1648_v39, %s1528_s11 }
 0x674   :  { %636 = vrot.lane.b32.xlu0 %v1648_v39, %s1530_s23 }
 0x6e3   :  { %v523_v57 = vpop.xlane.xlu0 %522 }
 0x6e4   :  { %1402 = vrcp.f32 %v523_v57 }
 0x6e7   :  { %v526_v58 = vpop.xlane.xlu0 %525 }
 0x6e8   :  { %1404 = vrcp.f32 %v526_v58 }
 0x6eb   :  { %v534_v59 = vpop.permute.xlu0 %533 }
 0x6ec   :  { %v539_v60 = vsel %vm315_vm3, %v534_v59, 0 }
 0x6ed   :  { %1293 = vmatpush3.bf16.msra.mxu1 %v539_v60 }
 0x6ee   :  { %v1403_v61 = vpop.eup %1402  ;;  %1304 = vmatprep.subr.bf16.mxu1 %v1523_v15 }
 0x6ef   :  { %v529_v63 = vmul.f32 %v1403_v61, %v1399_v53  ;;  %v637_v9 = vpop.permute.xlu0 %636 }
 0x6f1   :  { %v531_v2 = vpack.c.bf16 %v529_v63, %v529_v63 }
 0x6f2   :  { %v1405_v3 = vpop.eup %1404 }
 0x6f3   :  { %v530_v4 = vmul.f32 %v1405_v3, %v1401_v55  ;;  %1295 = vmatmul.mubr.msk.bf16.vlgmr.msra.gmra.mrb[12].mxu1 %vm191_vm2, %v531_v2 }
 0x6f4   :  { %1306 = vmatprep.mubr.msk.bf16.mxu1 %vm1524_vm1, %v1523_v15 }
 0x6f5   :  { %v532_v7 = vpack.c.bf16 %v530_v4, %v530_v4 }
 0x6f6   :  { %1305 = vmatpush3.bf16.xpose.msra.mxu1 %v644_v6 }
 0x6f7   :  { %1301 = vmatmul.mubr.msk.bf16.vlgmr.msra.gmra.mrb[16].mxu0 %vm191_vm2, %v532_v7  ;;  %1316 = vmatprep.subr.bf16.mxu1 %v1523_v15 }
 0x6f8   :  { %1311 = vmatpush3.bf16.xpose.msra.mxu0 %v694_v8  ;;  %1312 = vmatprep.mubr.msk.bf16.mxu0 %vm1524_vm1, %v1523_v15 }
 0x6f9   :  { %1322 = vmatprep.subr.bf16.mxu0 %v1523_v15 }
 0x6fd   :  { %1307 = vmatmul.mubr.msk.bf16.vlgmr.msra.gmra.mrb[16].mxu1 %vm191_vm2, %v637_v9 }
 0x6fe   :  { %1318 = vmatprep.mubr.msk.bf16.mxu1 %vm1524_vm1, %v1523_v15 }
 0x6ff   :  { %1313 = vmatmul.mubr.msk.bf16.vlgmr.msra.gmra.mrb[20].mxu0 %vm191_vm2, %v687_v10 }
 0x700   :  { %1324 = vmatprep.mubr.msk.bf16.mxu0 %vm1524_vm1, %v1523_v15 }
 0x7c6   :  { %v1729_v11 = vpop.f32.mrb[12].mxu1 }
 0x7c7   :  { %v1296_v12 = vpop.f32.mrb[13].mxu1 }
 0x7c8   :  { %v578_v13 = vpop.f32.mrb[14].mxu1 }
 0x7c9   :  { %v1297_v14 = vpop.f32.mrb[15].mxu1 }
 0x7ca   :  { %v1731_v16 = vpop.f32.mrb[16].mxu0 }
 0x7cb   :  { %v629_v17 = vpack.c.bf16 %v1731_v16, %v1729_v11  ;;  %v1302_v18 = vpop.f32.mrb[17].mxu0 }
 0x7cc   :  { %v626_v19 = vpop.f32.mrb[18].mxu0 }
 0x7cd   :  { %v1303_v20 = vpop.f32.mrb[19].mxu0 }
 0x7d0   :  { %v680_v21 = vpop.f32.mrb[16].mxu1 }
 0x7d1   :  { %v1308_v22 = vpop.f32.mrb[17].mxu1  ;;  %v736_v23 = vsel %vm191_vm2, %v680_v21, -inf }
 0x7d2   :  { %737 = vmax.xlane.f32.xlu0 %v736_v23  ;;  %v683_v24 = vpop.f32.mrb[18].mxu1  ;;  %v730_v25 = vpop.f32.mrb[20].mxu0 }
 0x7d3   :  { %v1309_v26 = vpop.f32.mrb[19].mxu1  ;;  %v1314_v27 = vpop.f32.mrb[21].mxu0  ;;  %v739_v28 = vsel %vm191_vm2, %v730_v25, -inf }
 0x7d4   :  { %740 = vmax.xlane.f32.xlu1 %v739_v28  ;;  %v733_v29 = vpop.f32.mrb[22].mxu0 }
 0x7d5   :  { %v1315_v30 = vpop.f32.mrb[23].mxu0 }
 0x7e5   :  { %808 = vrot.lane.b32.xlu1 %v1650_v42, %s1531_s24 }
 0x7e9   :  { %865 = vrot.lane.b32.xlu1 %v1648_v39, %s1532_s26 }
 0x7ed   :  { %915 = vrot.lane.b32.xlu1 %v1650_v42, %s1532_s26 }
 0x7f1   :  { %913 = vrot.lane.b32.xlu1 %v1650_v42, %s1533_s27 }
 0x85f   :  { %v738_v31 = vpop.xlane.xlu0 %737 }
 0x860   :  { %v742_v32 = vsub.f32 %v680_v21, %v738_v31 }
 0x861   :  { %v741_v33 = vpop.xlane.xlu1 %740 }
 0x862   :  { %v744_v34 = vmul.f32 1.442695, %v742_v32  ;;  %v743_v35 = vsub.f32 %v730_v25, %v741_v33 }
 0x864   :  { %1406 = vpow2.f32 %v744_v34  ;;  %v746_v36 = vmul.f32 1.442695, %v743_v35 }
 0x865   :  { %v809_v37 = vpop.permute.xlu1 %808 }
 0x866   :  { %1408 = vpow2.f32 %v746_v36  ;;  %v814_v38 = vsel %vm315_vm3, %v809_v37, 0 }
 0x867   :  { %1323 = vmatpush3.bf16.msra.mxu0 %v814_v38 }
 0x868   :  { %1334 = vmatprep.subr.bf16.mxu0 %v1523_v15 }
 0x869   :  { %v866_v50 = vpop.permute.xlu1 %865 }
 0x86a   :  { %v871_v56 = vsel %vm191_vm2, %v866_v50, 0 }
 0x86d   :  { %v916_v55 = vpop.permute.xlu1 %915 }
 0x86e   :  { %v1407_v40 = vpop.eup %1406  ;;  %v921_v58 = vsel %vm191_vm2, %v916_v55, 0 }
 0x86f   :  { %v748_v41 = vsel %vm191_vm2, %v1407_v40, 0.0 }
 0x870   :  { %v1409_v43 = vpop.eup %1408  ;;  %749 = vadd.xlane.f32.xlu0 %v748_v41 }
 0x871   :  { %v751_v44 = vsel %vm191_vm2, %v1409_v43, 0.0  ;;  %v914_v60 = vpop.permute.xlu1 %913 }
 0x874   :  { %752 = vadd.xlane.f32.xlu0 %v751_v44  ;;  %v1385_v44 = vld [vmem:[%s1817_s5 + $0x8] sm:$0xff]  }
 0x88a   :  { %760 = vrot.lane.b32.xlu0 %v1648_v39, %s1531_s24 }
 0x88e   :  { %863 = vrot.lane.b32.xlu0 %v1648_v39, %s1533_s27 }
 0x8fd   :  { %v750_v45 = vpop.xlane.xlu0 %749 }
 0x8fe   :  { %1410 = vrcp.f32 %v750_v45 }
 0x901   :  { %v753_v46 = vpop.xlane.xlu0 %752 }
 0x902   :  { %1412 = vrcp.f32 %v753_v46 }
 0x905   :  { %v761_v47 = vpop.permute.xlu0 %760 }
 0x906   :  { %v766_v48 = vsel %vm315_vm3, %v761_v47, 0 }
 0x907   :  { %1317 = vmatpush3.bf16.msra.mxu1 %v766_v48 }
 0x908   :  { %v1411_v49 = vpop.eup %1410  ;;  %1328 = vmatprep.subr.bf16.mxu1 %v1523_v15 }
 0x909   :  { %v756_v51 = vmul.f32 %v1411_v49, %v1407_v40  ;;  %v864_v59 = vpop.permute.xlu0 %863 }
 0x90b   :  { %v758_v52 = vpack.c.bf16 %v756_v51, %v756_v51 }
 0x90c   :  { %v1413_v53 = vpop.eup %1412 }
 0x90d   :  { %v757_v54 = vmul.f32 %v1413_v53, %v1409_v43  ;;  %1319 = vmatmul.mubr.msk.bf16.vlgmr.msra.gmra.mrb[20].mxu1 %vm191_vm2, %v758_v52  ;;  %v1384_v43 = vld [vmem:[%s1817_s5] sm:$0xff]  }
 0x90e   :  { %1330 = vmatprep.mubr.msk.bf16.mxu1 %vm1524_vm1, %v1523_v15 }
 0x90f   :  { %v759_v57 = vpack.c.bf16 %v757_v54, %v757_v54 }
 0x910   :  { %1329 = vmatpush3.bf16.xpose.msra.mxu1 %v871_v56 }
 0x911   :  { %1325 = vmatmul.mubr.msk.bf16.vlgmr.msra.gmra.mrb[24].mxu0 %vm191_vm2, %v759_v57  ;;  %1340 = vmatprep.subr.bf16.mxu1 %v1523_v15 }
 0x912   :  { %1335 = vmatpush3.bf16.xpose.msra.mxu0 %v921_v58  ;;  %1336 = vmatprep.mubr.msk.bf16.mxu0 %vm1524_vm1, %v1523_v15 }
 0x913   :  { %1346 = vmatprep.subr.bf16.mxu0 %v1523_v15 }
 0x917   :  { %1331 = vmatmul.mubr.msk.bf16.vlgmr.msra.gmra.mrb[24].mxu1 %vm191_vm2, %v864_v59 }
 0x918   :  { %1342 = vmatprep.mubr.msk.bf16.mxu1 %vm1524_vm1, %v1523_v15 }
 0x919   :  { %1337 = vmatmul.mubr.msk.bf16.vlgmr.msra.gmra.mrb[28].mxu0 %vm191_vm2, %v914_v60 }
 0x91a   :  { %1348 = vmatprep.mubr.msk.bf16.mxu0 %vm1524_vm1, %v1523_v15 }
 0x9e0   :  { %v802_v61 = vpop.f32.mrb[20].mxu1 }
 0x9e1   :  { %v1320_v62 = vpop.f32.mrb[21].mxu1 }
 0x9e2   :  { %v805_v63 = vpop.f32.mrb[22].mxu1 }
 0x9e3   :  { %v1321_v2 = vpop.f32.mrb[23].mxu1 }
 0x9e4   :  { %v850_v3 = vpop.f32.mrb[24].mxu0 }
 0x9e5   :  { %v856_v4 = vpack.c.bf16 %v850_v3, %v802_v61  ;;  %v1326_v5 = vpop.f32.mrb[25].mxu0 }
 0x9e6   :  { %v853_v6 = vpop.f32.mrb[26].mxu0 }
 0x9e7   :  { %v1327_v7 = vpop.f32.mrb[27].mxu0 }
 0x9ea   :  { %v907_v8 = vpop.f32.mrb[24].mxu1 }
 0x9eb   :  { %v1332_v9 = vpop.f32.mrb[25].mxu1  ;;  %v963_v10 = vsel %vm191_vm2, %v907_v8, -inf }
 0x9ec   :  { %964 = vmax.xlane.f32.xlu0 %v963_v10  ;;  %v910_v12 = vpop.f32.mrb[26].mxu1  ;;  %v957_v13 = vpop.f32.mrb[28].mxu0 }
 0x9ed   :  { %v1333_v14 = vpop.f32.mrb[27].mxu1  ;;  %v1338_v18 = vpop.f32.mrb[29].mxu0  ;;  %v966_v19 = vsel %vm191_vm2, %v957_v13, -inf }
 0x9ee   :  { %967 = vmax.xlane.f32.xlu1 %v966_v19  ;;  %v960_v20 = vpop.f32.mrb[30].mxu0 }
 0x9ef   :  { %v1339_v21 = vpop.f32.mrb[31].mxu0 }
 0x9ff   :  { %1035 = vrot.lane.b32.xlu1 %v1650_v42, %s1534_s28 }
 0xa03   :  { %631 = vrot.lane.b32.xlu1 %v629_v17, %s1521_s25 }
 0xa07   :  { %858 = vrot.lane.b32.xlu1 %v856_v4, %s1535_s29 }
 0xa79   :  { %v965_v22 = vpop.xlane.xlu0 %964 }
 0xa7a   :  { %v969_v23 = vsub.f32 %v907_v8, %v965_v22 }
 0xa7b   :  { %v968_v24 = vpop.xlane.xlu1 %967 }
 0xa7c   :  { %v971_v25 = vmul.f32 1.442695, %v969_v23  ;;  %v970_v26 = vsub.f32 %v957_v13, %v968_v24 }
 0xa7e   :  { %1414 = vpow2.f32 %v971_v25  ;;  %v973_v27 = vmul.f32 1.442695, %v970_v26 }
 0xa7f   :  { %v1036_v28 = vpop.permute.xlu1 %1035 }
 0xa80   :  { %1416 = vpow2.f32 %v973_v27  ;;  %v1041_v29 = vsel %vm315_vm3, %v1036_v28, 0 }
 0xa81   :  { %1347 = vmatpush3.bf16.msra.mxu0 %v1041_v29 }
 0xa83   :  { %v632_v42 = vpop.permute.xlu1 %631 }
 0xa84   :  { %635 = vst.msk [vmem:[#allocation2] sm:$0xff] %vm634_vm4, %v632_v42 }
 0xa87   :  { %v859_v11 = vpop.permute.xlu1 %858 }
 0xa88   :  { %v1415_v16 = vpop.eup %1414  ;;  %862 = vst.msk [vmem:[#allocation2] sm:$0xff] %vm861_vm5, %v859_v11 }
 0xa89   :  { %v975_v17 = vsel %vm191_vm2, %v1415_v16, 0.0 }
 0xa8a   :  { %v1417_v30 = vpop.eup %1416  ;;  %976 = vadd.xlane.f32.xlu0 %v975_v17 }
 0xa8b   :  { %v978_v31 = vsel %vm191_vm2, %v1417_v30, 0.0 }
 0xa8e   :  { %979 = vadd.xlane.f32.xlu0 %v978_v31 }
 0xaa4   :  { %987 = vrot.lane.b32.xlu0 %v1648_v39, %s1534_s28 }
 0xb17   :  { %v977_v32 = vpop.xlane.xlu0 %976 }
 0xb18   :  { %1418 = vrcp.f32 %v977_v32 }
 0xb1b   :  { %v980_v33 = vpop.xlane.xlu0 %979 }
 0xb1c   :  { %1420 = vrcp.f32 %v980_v33 }
 0xb1f   :  { %v988_v34 = vpop.permute.xlu0 %987 }
 0xb20   :  { %v993_v35 = vsel %vm315_vm3, %v988_v34, 0 }
 0xb21   :  { %1341 = vmatpush3.bf16.msra.mxu1 %v993_v35 }
 0xb22   :  { %v1419_v36 = vpop.eup %1418  ;;  %1352 = vmatprep.subr.bf16.mxu1 %v1523_v15 }
 0xb23   :  { %v983_v37 = vmul.f32 %v1419_v36, %v1415_v16 }
 0xb25   :  { %v985_v38 = vpack.c.bf16 %v983_v37, %v983_v37 }
 0xb26   :  { %v1421_v40 = vpop.eup %1420 }
 0xb27   :  { %v984_v41 = vmul.f32 %v1421_v40, %v1417_v30  ;;  %1343 = vmatmul.mubr.msk.bf16.vlgmr.msra.gmra.mrb[28].mxu1 %vm191_vm2, %v985_v38 }
 0xb28   :  { %1356 = vmatprep.mubr.msk.bf16.mxu1 %vm1524_vm1, %v1523_v15  ;;  %1353 = vmatpush3.bf16.msra.mxu1 %v1384_v43 }
 0xb29   :  { %v986_v39 = vpack.c.bf16 %v984_v41, %v984_v41  ;;  %1354 = vmatprep.subr.bf16.mxu1 %v1523_v15  ;;  %v1204_v15 = vld [vmem:[%s1818_s6] ss:$0 sm:$0xff] }
 0xb2b   :  { %1349 = vmatmul.mubr.msk.bf16.vlgmr.msra.gmra.mrb[32].mxu0 %vm191_vm2, %v986_v39 }
 0xb2c   :  { %1355 = vmatpush3.bf16.msra.mxu1 %v1385_v44 }
 0xbfa   :  { %v1029_v45 = vpop.f32.mrb[28].mxu1 }
 0xbfb   :  { %v1344_v46 = vpop.f32.mrb[29].mxu1 }
 0xbfc   :  { %v1032_v47 = vpop.f32.mrb[30].mxu1 }
 0xbfd   :  { %v1345_v48 = vpop.f32.mrb[31].mxu1 }
 0xbfe   :  { %v1077_v49 = vpop.f32.mrb[32].mxu0 }
 0xbff   :  { %v1083_v50 = vpack.c.bf16 %v1077_v49, %v1029_v45  ;;  %v1350_v51 = vpop.f32.mrb[33].mxu0 }
 0xc00   :  { %v1080_v52 = vpop.f32.mrb[34].mxu0 }
 0xc01   :  { %1085 = vrot.lane.b32.xlu0 %v1083_v50, %s1536_s12  ;;  %v1351_v53 = vpop.f32.mrb[35].mxu0 }
 0xc73   :  { %v1086_v54 = vpop.permute.xlu0 %1085 }
 0xc74   :  { %1089 = vst.msk [vmem:[#allocation2] sm:$0xff] %vm1088_vm6, %v1086_v54 }
 0xc7b   :  { %v1090_v55 = vld [vmem:[#allocation2] sm:$0xff] }
 0xc7c   :  { %1357 = vmatmul.mubr.msk.bf16.vlgmr.msra.gmra.mrb[32].mxu1 %vm69_vm0, %v1090_v55 }
 0xd4f   :  { %v1151_v56 = vpop.f32.mrb[32].mxu1 }
 0xd50   :  { %v1152_v57 = vadd.f32 %v1204_v15, %v1151_v56  ;;  %v1358_v58 = vpop.f32.mrb[33].mxu1 }
 0xd51   :  { %v1154_v59 = vpop.f32.mrb[34].mxu1 }
 0xd52   :  { %v1158_v60 = vadd.f32 %v1152_v57, %v1619_v0  ;;  %v1155_v61 = vadd.f32 %v1204_v15, %v1154_v59  ;;  %v1359_v62 = vpop.f32.mrb[35].mxu1 }
 0xd54   :  { %1160 = vst.msk [vmem:[#allocation9] sm:$0xff] %vm69_vm0, %v1158_v60  ;;  %v1159_v63 = vadd.f32 %v1155_v61, %v1621_v1 }
 0xd56   :  { %1161 = vst.msk [vmem:[#allocation9 + $0x8] sm:$0xff] %vm69_vm0, %v1159_v63 }
 0xd57   :  { %1499 = shalt.err (!%p1496_p0)
}
 0xd58   :  { %s1500_s17 = scalar_lea.hbm %s1819_s7, 256 }
 0xd59   :  { %p1501_p1 = scmp.ne.s32.totalorder %s1819_s7, %s1500_s17  ;;  %p1504_p2 = scmp.lt.u32.totalorder %s1500_s17, %s1819_s7 }
 0xd5b   :  { %p1506_p3 = pnand %p1504_p2, %p1501_p1 }
 0xd5d   :  { %1509 = shalt.err (!%p1506_p3)
}
 0xd5e   :  { %1173 = dma.vmem_to_hbm [thread:$0]  %s1168_s15, 256, %s1819_s7, [#allocation5], %s1520_s3, %s1520_s3, %s1521_s25  }
 0xd5f   :  { %1514 = dma.done.wait [#allocation5], 256  }
 0xd60   :  { %1515 = vsyncadd [#allocation5], 4294967040 }
 0xd61   :  { %1177 = vsyncpa [#allocation4], 1 }
 0xd62   :  { %1178 = vsyncpa [#allocation7], 1 }
 0xd63   :  { %1179 = vsyncpa [#allocation5], 1 }

</bundles_post_ra>
